<compile_context>
chip_gen: v5e
topology: v5e:2x2
jax: 0.10.0
libtpu: 0.0.40
codegen_flags: <defaults>
</compile_context>

<pallas_src>
import jax
import jax.numpy as jnp
from jax.experimental import pallas as pl
from jax.experimental.pallas import tpu as pltpu


def critic_kernel(x_ref, w1_ref, b1_ref, w2_ref, b2wq_ref, bq_ref, o_ref):
    """Fused fc1->relu->fc2->relu->q for one batch tile of tb rows."""
    x = x_ref[...].astype(jnp.float32)

    # fc1 + relu: a single K-wide MXU pass (one dot instead of four partials).
    h1 = jnp.dot(x, w1_ref[...], preferred_element_type=jnp.float32)
    h1 = jnp.maximum(h1 + b1_ref[...], 0.0)

    # fc2 + relu (bias is row 0 of the fused [b2; wq] slab).
    h2 = jnp.dot(h1, w2_ref[...], preferred_element_type=jnp.float32)
    h2 = jnp.maximum(h2 + b2wq_ref[0:1, :], 0.0)

    # q projection (N=1): VPU multiply + lane reduction keeps the MXU out of
    # the epilogue; scalar bias comes from SMEM.
    q = jnp.sum(h2 * b2wq_ref[1:2, :], axis=-1) + bq_ref[0]

    # Lane-dense store: batch sits on the lane axis of the (1, tb) block.
    o_ref[...] = q.reshape(1, -1).astype(o_ref.dtype)


def _pick_batch_tile(padded_b):
    """Batch tile: a multiple of 128, or the full batch when it is small.

    Prefers >= 2 grid steps so the "parallel" grid axis can be split across the
    two TensorCores of a v7x chip; capped at 2048 rows (per-step VMEM stays
    well under 1 MiB on every generation, and >=512-row tiles already amortize
    the ~0.35 us/step grid overhead).
    """
    if padded_b % 128 != 0:
        return padded_b                      # tiny batch: single full block
    for t in (2048, 1024, 512, 256, 128):
        if padded_b % t == 0 and padded_b // t >= 2:
            return t
    return 128                               # padded_b == 128


def critic_forward(state, action, others_states, others_actions, params,
                   activation_dtype=jnp.float32):
    """Pallas port of CriticNetwork.forward.

    Set activation_dtype=jnp.bfloat16 to halve HBM bytes for the streamed batch
    (useful at large B on bandwidth-limited v5e); accumulation stays f32.
    """
    w1, b1, w2, b2, wq, bq = params
    B = state.shape[0]
    fc1_dims = w1.shape[1]
    fc2_dims = w2.shape[1]

    # The module's own T.cat: one (B, K) activation slab -> one K-wide fc1 dot
    # in the kernel and a single streamed operand.
    x = jnp.concatenate([state, action, others_states, others_actions], axis=1)
    x = x.astype(activation_dtype)
    K = x.shape[1]

    # Fuse b2 and the q-row weight into one resident (2, fc2) slab; the scalar
    # q bias goes to SMEM.
    b2wq = jnp.concatenate(
        [b2.reshape(1, fc2_dims), wq.reshape(1, fc2_dims)], axis=0
    ).astype(jnp.float32)
    b1_row = b1.reshape(1, fc1_dims).astype(jnp.float32)
    bq_s = bq.reshape(1).astype(jnp.float32)

    # Pad the batch so every (1, tb) output block is 128-lane aligned (or the
    # full array) -> unmasked lane-dense stores and valid block shapes for any B.
    if B >= 128 and B % 128 != 0:
        padded_b = ((B + 127) // 128) * 128
    else:
        padded_b = B
    if padded_b != B:
        x = jnp.pad(x, ((0, padded_b - B), (0, 0)))

    tb = _pick_batch_tile(padded_b)
    grid = (padded_b // tb,)

    def resident(shape):
        # Same block every grid step -> stays VMEM-resident across the grid.
        return pl.BlockSpec(shape, lambda i: (0, 0))

    out = pl.pallas_call(
        critic_kernel,
        out_shape=jax.ShapeDtypeStruct((1, padded_b), jnp.float32),
        grid=grid,
        in_specs=[
            # Streamed activation tile.  If a bundle dump shows exposed DMA at
            # large tb, add pipeline_mode=pl.Buffered(3) here.
            pl.BlockSpec((tb, K), lambda i: (i, 0)),
            resident((K, fc1_dims)),              # W1 (single operand, one dot)
            resident((1, fc1_dims)),              # b1
            resident((fc1_dims, fc2_dims)),       # W2
            resident((2, fc2_dims)),              # [b2 ; wq_row] fused slab
            pl.BlockSpec(memory_space=pltpu.MemorySpace.SMEM),  # scalar q bias
        ],
        out_specs=pl.BlockSpec((1, tb), lambda i: (0, i)),
        compiler_params=pltpu.CompilerParams(
            dimension_semantics=("parallel",)),
    )(x, w1.astype(jnp.float32), b1_row, w2.astype(jnp.float32), b2wq, bq_s)

    # Lane-dense (1, padded_b) -> PyTorch (B, 1).
    return out[0, :B].reshape(B, 1)


def init_params(key, total_inputs, fc1_dims, fc2_dims):
    """Deterministic synthetic init (same fan-in uniform scheme as nn.Linear)."""
    ks = jax.random.split(key, 6)

    def lin(kw, kb, fan_in, fan_out):
        bound = 1.0 / jnp.sqrt(fan_in)
        w = jax.random.uniform(kw, (fan_in, fan_out), jnp.float32, -bound, bound)
        b = jax.random.uniform(kb, (1, fan_out), jnp.float32, -bound, bound)
        return w, b

    w1, b1 = lin(ks[0], ks[1], total_inputs, fc1_dims)
    w2, b2 = lin(ks[2], ks[3], fc1_dims, fc2_dims)
    wq, bq = lin(ks[4], ks[5], fc2_dims, 1)
    return (w1, b1, w2, b2, wq, bq)


if __name__ == "__main__":
    # Shapes consistent with the module:
    #   n_agents=2, input_dims=8, n_actions=4 -> total_inputs = 2*(8+4) = 24
    #   fc1_dims=32, fc2_dims=32
    B, input_dims, n_actions, n_agents = 8, 8, 4, 2
    fc1_dims, fc2_dims = 32, 32
    total_inputs = n_agents * (input_dims + n_actions)

    keys = jax.random.split(jax.random.PRNGKey(0), 9)
    params = init_params(keys[0], total_inputs, fc1_dims, fc2_dims)

    def make_inputs(ks, batch):
        s = jax.random.normal(ks[0], (batch, input_dims), jnp.float32)
        a = jax.random.normal(ks[1], (batch, n_actions), jnp.float32)
        os_ = jax.random.normal(ks[2], (batch, (n_agents - 1) * input_dims),
                                jnp.float32)
        oa = jax.random.normal(ks[3], (batch, (n_agents - 1) * n_actions),
                               jnp.float32)
        return s, a, os_, oa

    def reference(s, a, os_, oa):
        w1, b1, w2, b2, wq, bq = params
        c = jnp.concatenate([s, a, os_, oa], axis=1)
        h = jnp.maximum(c @ w1 + b1, 0.0)
        h = jnp.maximum(h @ w2 + b2, 0.0)
        return h @ wq + bq

    fwd = jax.jit(critic_forward)

    # Case 1: small batch -> single full-extent block, grid=(1,).
    s, a, os_, oa = make_inputs(keys[1:5], B)
    q = fwd(s, a, os_, oa, params)
    jax.block_until_ready(q)
    assert q.shape == (B, 1)
    assert jnp.allclose(q, reference(s, a, os_, oa), atol=1e-4, rtol=1e-4)

    # Case 2: batch not a multiple of 128 -> padded to 384, tb=128, 3-step
    # "parallel" grid (exercises the 128-lane tiling and the v7x core split).
    B2 = 300
    s2, a2, os2, oa2 = make_inputs(keys[5:9], B2)
    q2 = fwd(s2, a2, os2, oa2, params)
    jax.block_until_ready(q2)
    assert q2.shape == (B2, 1)
    assert jnp.allclose(q2, reference(s2, a2, os2, oa2), atol=1e-4, rtol=1e-4)

    # TODO(synk): the module's Adam optimizer and checkpoint save/load are
    # training / IO utilities, not part of the forward pass, and are not ported.
    print("KERNEL_OK")
</pallas_src>

<mosaic_0001>
module attributes {stable_mosaic.version = 11 : i64} {
  func.func @critic_kernel(%arg0: i32, %arg1: memref<8x24xf32, #tpu.memory_space<vmem>>, %arg2: memref<24x32xf32, #tpu.memory_space<vmem>>, %arg3: memref<1x32xf32, #tpu.memory_space<vmem>>, %arg4: memref<32x32xf32, #tpu.memory_space<vmem>>, %arg5: memref<2x32xf32, #tpu.memory_space<vmem>>, %arg6: memref<1xf32, #tpu.memory_space<smem>>, %arg7: memref<1x8xf32, #tpu.memory_space<vmem>>) attributes {dimension_semantics = [#tpu.dimension_semantics<parallel>], iteration_bounds = array<i64: 1>, scalar_prefetch = 0 : i64, scratch_operands = 0 : i64, tpu.core_type = #tpu.core_type<tc>, window_params = [{transform_indices = @transform_0, window_bounds = array<i64: 8, 24>}, {pipeline_mode = #tpu.pipeline_mode<synchronous>, transform_indices = @transform_1, window_bounds = array<i64: 24, 32>}, {pipeline_mode = #tpu.pipeline_mode<synchronous>, transform_indices = @transform_2, window_bounds = array<i64: 1, 32>}, {pipeline_mode = #tpu.pipeline_mode<synchronous>, transform_indices = @transform_3, window_bounds = array<i64: 32, 32>}, {pipeline_mode = #tpu.pipeline_mode<synchronous>, transform_indices = @transform_4, window_bounds = array<i64: 2, 32>}, {transform_indices = @transform_5, window_bounds = array<i64: 1>}, {transform_indices = @transform_6, window_bounds = array<i64: 1, 8>}]} {
    %c0 = arith.constant 0 : index
    %c0_0 = arith.constant 0 : index
    %0 = vector.load %arg1[%c0, %c0_0] : memref<8x24xf32, #tpu.memory_space<vmem>>, vector<8x24xf32>
    %c0_1 = arith.constant 0 : index
    %c0_2 = arith.constant 0 : index
    %1 = vector.load %arg2[%c0_1, %c0_2] : memref<24x32xf32, #tpu.memory_space<vmem>>, vector<24x32xf32>
    %cst = arith.constant dense<0.000000e+00> : vector<8x32xf32>
    %2 = tpu.matmul %0, %1, %cst {dimension_numbers = #tpu.dot_dimension_numbers<[1], [0], [0], [1], [0, 0, 1, 1], [], []>} : vector<8x24xf32>, vector<24x32xf32>, vector<8x32xf32> -> vector<8x32xf32>
    %c0_3 = arith.constant 0 : index
    %c0_4 = arith.constant 0 : index
    %3 = vector.load %arg3[%c0_3, %c0_4] : memref<1x32xf32, #tpu.memory_space<vmem>>, vector<1x32xf32>
    %4 = vector.broadcast %3 : vector<1x32xf32> to vector<8x32xf32>
    %5 = arith.addf %2, %4 : vector<8x32xf32>
    %cst_5 = arith.constant 0.000000e+00 : f32
    %6 = vector.broadcast %cst_5 : f32 to vector<8x32xf32>
    %7 = arith.maximumf %5, %6 : vector<8x32xf32>
    %c0_6 = arith.constant 0 : index
    %c0_7 = arith.constant 0 : index
    %8 = vector.load %arg4[%c0_6, %c0_7] : memref<32x32xf32, #tpu.memory_space<vmem>>, vector<32x32xf32>
    %cst_8 = arith.constant dense<0.000000e+00> : vector<8x32xf32>
    %9 = tpu.matmul %7, %8, %cst_8 {dimension_numbers = #tpu.dot_dimension_numbers<[1], [0], [0], [1], [0, 0, 1, 1], [], []>} : vector<8x32xf32>, vector<32x32xf32>, vector<8x32xf32> -> vector<8x32xf32>
    %c0_9 = arith.constant 0 : index
    %c0_10 = arith.constant 0 : index
    %10 = vector.load %arg5[%c0_9, %c0_10] : memref<2x32xf32, #tpu.memory_space<vmem>>, vector<1x32xf32>
    %11 = vector.broadcast %10 : vector<1x32xf32> to vector<8x32xf32>
    %12 = arith.addf %9, %11 : vector<8x32xf32>
    %cst_11 = arith.constant 0.000000e+00 : f32
    %13 = vector.broadcast %cst_11 : f32 to vector<8x32xf32>
    %14 = arith.maximumf %12, %13 : vector<8x32xf32>
    %c1 = arith.constant 1 : index
    %c0_12 = arith.constant 0 : index
    %15 = vector.load %arg5[%c1, %c0_12] : memref<2x32xf32, #tpu.memory_space<vmem>>, vector<1x32xf32>
    %16 = vector.broadcast %15 : vector<1x32xf32> to vector<8x32xf32>
    %17 = arith.mulf %14, %16 : vector<8x32xf32>
    %cst_13 = arith.constant dense<0.000000e+00> : vector<8xf32>
    %18 = vector.multi_reduction <add>, %17, %cst_13 [1] : vector<8x32xf32> to vector<8xf32>
    %c0_14 = arith.constant 0 : index
    %19 = memref.load %arg6[%c0_14] : memref<1xf32, #tpu.memory_space<smem>>
    %20 = vector.broadcast %19 : f32 to vector<8xf32>
    %21 = arith.addf %18, %20 : vector<8xf32>
    %22 = vector.shape_cast %21 : vector<8xf32> to vector<1x8xf32>
    %c0_15 = arith.constant 0 : index
    %c0_16 = arith.constant 0 : index
    %23 = vector.load %arg7[%c0_15, %c0_16] : memref<1x8xf32, #tpu.memory_space<vmem>>, vector<1x8xf32>
    tpu.vector_store %arg7[%c0_15, %c0_16], %22 {strides = array<i32>} : memref<1x8xf32, #tpu.memory_space<vmem>>, vector<1x8xf32>,
    return
  }
  func.func @transform_0(%arg0: i32) -> (i32, i32) {
    %c0_i32 = arith.constant 0 : i32
    %c0_i32_0 = arith.constant 0 : i32
    return %arg0, %c0_i32 : i32, i32
  }
  func.func @transform_1(%arg0: i32) -> (i32, i32) {
    %c0_i32 = arith.constant 0 : i32
    %c0_i32_0 = arith.constant 0 : i32
    %c0_i32_1 = arith.constant 0 : i32
    return %c0_i32, %c0_i32_0 : i32, i32
  }
  func.func @transform_2(%arg0: i32) -> (i32, i32) {
    %c0_i32 = arith.constant 0 : i32
    %c0_i32_0 = arith.constant 0 : i32
    %c0_i32_1 = arith.constant 0 : i32
    return %c0_i32, %c0_i32_0 : i32, i32
  }
  func.func @transform_3(%arg0: i32) -> (i32, i32) {
    %c0_i32 = arith.constant 0 : i32
    %c0_i32_0 = arith.constant 0 : i32
    %c0_i32_1 = arith.constant 0 : i32
    return %c0_i32, %c0_i32_0 : i32, i32
  }
  func.func @transform_4(%arg0: i32) -> (i32, i32) {
    %c0_i32 = arith.constant 0 : i32
    %c0_i32_0 = arith.constant 0 : i32
    %c0_i32_1 = arith.constant 0 : i32
    return %c0_i32, %c0_i32_0 : i32, i32
  }
  func.func @transform_5(%arg0: i32) -> i32 {
    %c0_i32 = arith.constant 0 : i32
    %c0_i32_0 = arith.constant 0 : i32
    return %c0_i32 : i32
  }
  func.func @transform_6(%arg0: i32) -> (i32, i32) {
    %c0_i32 = arith.constant 0 : i32
    %c0_i32_0 = arith.constant 0 : i32
    return %c0_i32, %arg0 : i32, i32
  }
}

</mosaic_0001>

<bundles_post_ra>
// kernel: critic_forward.1
= control target key start
LH: loop header
LB: loop body
LE: loop exit
PB: predicated region body
PF: predicated region fallthrough
CT: control target
= control target key end

     0   :  { %12 = vsyncpa [#allocation4], 0  ;;  %s271_s0 = inlined_call_operand.vmem [shape: f32[8,24], index: 0, kind: input, shape index: {}]   ;;  %s272_s1 = inlined_call_operand.hbm [shape: f32[24,32], index: 1, kind: input, shape index: {}]   ;;  %s273_s2 = inlined_call_operand.vmem [shape: f32[1,32], index: 2, kind: input, shape index: {}]   ;;  %s274_s3 = inlined_call_operand.vmem [shape: f32[32,32], index: 3, kind: input, shape index: {}]   ;;  %s275_s4 = inlined_call_operand.vmem [shape: f32[2,32], index: 4, kind: input, shape index: {}]   ;;  %s276_s5 = inlined_call_operand.<no memory space> [shape: f32[1], index: 5, kind: input, shape index: {}]   ;;  %s277_s6 = inlined_call_operand.hbm [shape: f32[1,8], index: 6, kind: output, shape index: {}]  }
   0x1   :  { %13 = vsyncpa [#allocation5], 0  ;;  %s20_s23 = sshll.u32 %s272_s1, 4  ;;  %s199_s24 = smov [#allocation3]   ;;  %s21_s23 = int_to_ptr.hbm [resolvable:$true] %s20_s23 }
   0x2   :  { %s22_s25 = sshll.u32 %s199_s24, 4  ;;  %s200_s26 = smov 128   ;;  %s23_s25 = int_to_ptr.vmem [resolvable:$true] %s22_s25 }
   0x3   :  { %s201_s27 = smov 8  }
   0x4   :  { %28 = dma.hbm_to_vmem [thread:$0]  %s21_s23, 384, %s23_s25, [#allocation4], %s200_s26, %s200_s26, %s201_s27  }
   0x5   :  { %195 = dma.done.wait [#allocation4], 384  }
   0x6   :  { %196 = vsyncadd [#allocation4], 4294966912  ;;  %v44_v0 = vld [vmem:[#allocation3 + $0x10] sm:$0xff]  ;;  %v43_v1 = vld [vmem:[#allocation3 + $0x8] sm:$0xff]  ;;  %vm49_vm0 = vcmask 195584   ;;  %vm80_vm1 = vcmask 261120   ;;  %v115_v19 = vlaneseq  ;;  %v112_v20 = vstv %s276_s5 }
   0x7   :  { %66 = vmatpush.msra.mxu0 %v44_v0  ;;  %v77_v2 = vld [vmem:[%s274_s3 + $0x18] sm:$0xff]  ;;  %v42_v3 = vld [vmem:[#allocation3] sm:$0xff]  ;;  %v76_v5 = vld [vmem:[%s274_s3 + $0x10] sm:$0xff]  ;;  %s202_s18 = smov [#allocation6]   ;;  %s128_s22 = sshll.u32 %s277_s6, 4  ;;  %vm119_vm2 = vcmask 57344   ;;  %s129_s22 = int_to_ptr.hbm [resolvable:$true] %s128_s22 }
   0x8   :  { %96 = vmatpush.msra.mxu1 %v77_v2  ;;  %v41_v4 = vld [vmem:[%s271_s0] sm:$0xff]  ;;  %v75_v6 = vld [vmem:[%s274_s3 + $0x8] sm:$0xff]  ;;  %v116_v21 = vand.u32 127, %v115_v19  ;;  %s126_s19 = sshll.u32 %s202_s18, 4  ;;  %s127_s19 = int_to_ptr.vmem [resolvable:$true] %s126_s19 }
   0x9   :  { %67 = vmatpush.msra.mxu0 %v43_v1  ;;  %v74_v7 = vld [vmem:[%s274_s3] sm:$0xff] }
   0xa   :  { %97 = vmatpush.msra.mxu1 %v76_v5  ;;  %v144_v8 = vld [vmem:[%s273_s2] ss:$0 sm:$0xff]  ;;  %v146_v15 = vld [vmem:[%s275_s4 + $0x1] ss:$0 sm:$0xff] }
   0xb   :  { %68 = vmatpush.msra.mxu0 %v42_v3  ;;  %v145_v12 = vld [vmem:[%s275_s4] ss:$0 sm:$0xff] }
   0xc   :  { %138 = vmatmul.msk.f32.vlgmr.msra.gmra.mxu0 %vm49_vm0, %v41_v4  ;;  %98 = vmatpush.msra.mxu1 %v75_v6 }
   0xe   :  { %99 = vmatpush.msra.mxu1 %v74_v7 }
  0x89   :  { %v70_v9 = vpop.f32.mrf.mxu0 }
  0x8a   :  { %v71_v10 = vadd.f32 %v144_v8, %v70_v9 }
  0x8c   :  { %v73_v11 = vmax.f32 %v71_v10, 0.0 }
  0x8e   :  { %139 = vmatmul.msk.f32.vlgmr.msra.gmra.mxu1 %vm80_vm1, %v73_v11 }
 0x10b   :  { %v101_v13 = vpop.f32.mrf.mxu1 }
 0x10c   :  { %v102_v14 = vadd.f32 %v145_v12, %v101_v13 }
 0x10e   :  { %v104_v16 = vmax.f32 %v102_v14, 0.0 }
 0x110   :  { %v107_v17 = vmul.f32 %v146_v15, %v104_v16 }
 0x112   :  { %v108_v18 = vsel %vm80_vm1, %v107_v17, 0.0 }
 0x113   :  { %109 = vadd.xlane.f32.xlu0 %v108_v18 }
 0x186   :  { %v110_v22 = vpop.xlane.xlu0 %109 }
 0x187   :  { %v113_v23 = vadd.f32 %v112_v20, %v110_v22 }
 0x189   :  { %v117_v24 = vperm.slane %v113_v23, %v116_v21 }
 0x18b   :  { %120 = vst.msk [vmem:[#allocation6] sm:$0x1] %vm119_vm2, %v117_v24 }
 0x18c   :  { %131 = dma.vmem_to_hbm [thread:$0]  %s127_s19, 16, %s129_s22, [#allocation5]  }
 0x18d   :  { %197 = dma.done.wait [#allocation5], 16  }
 0x18e   :  { %198 = vsyncadd [#allocation5], 4294967280 }
 0x18f   :  { %136 = vsyncpa [#allocation4], 1 }
 0x190   :  { %137 = vsyncpa [#allocation5], 1 }

</bundles_post_ra>
